<compile_context>
chip_gen: v7x
topology: tpu7x:2x2x1
jax: 0.10.0
libtpu: 0.0.40
codegen_flags: <defaults>
</compile_context>

<pallas_src>
import functools
import math

import jax
import jax.numpy as jnp
from jax import lax
from jax.experimental import pallas as pl
from jax.experimental.pallas import tpu as pltpu

LANES = 128
SUBLANES = 8
CHUNK_ROWS = 64                 # rows per in-kernel compute chunk (8 vregs per f32 temp)
TARGET_TILE_BYTES = 512 * 1024  # per-input DMA tile target (Pallas double-buffers it)


def _round_up(x, m):
    return ((x + m - 1) // m) * m


def _num_tensorcores_per_chip():
    # v7x exposes 2 TensorCores behind one device; v5e/v6e have 1.  Detection is
    # conservative: single-core chips never see CORE_PARALLEL semantics.
    try:
        kind = jax.devices()[0].device_kind.lower()
    except Exception:
        return 1
    return 2 if ("v7" in kind or "7x" in kind) else 1


def _focal_term(d, beta):
    # beta is a trace-time constant -> static Python branch (no jnp.power for
    # small integer exponents: avoids an exp+log pair on the EUP).
    if beta == 2:
        return d * d
    if float(beta).is_integer() and 1 <= int(beta) <= 4:
        f = d
        for _ in range(int(beta) - 1):
            f = f * d
        return f
    return jnp.power(d, jnp.float32(beta))


def _qfl_kernel(pred_ref, targ_ref, *out_refs, beta, rows_valid, tile_rows,
                chunk_rows, total_blocks, need_focal):
    if need_focal:
        loss_out_ref, focal_out_ref = out_refs
    else:
        (loss_out_ref,) = out_refs
        focal_out_ref = None

    i = pl.program_id(0)
    j = pl.program_id(1)
    block_id = i * pl.num_programs(1) + j
    n_chunks = tile_rows // chunk_rows
    ragged = (rows_valid % tile_rows) != 0   # static: only the last block can be ragged

    # (8,128) partial-sum accumulators live directly in the output blocks, which
    # stay VMEM-resident across the inner (reduction) grid axis j.
    @pl.when(j == 0)
    def _():
        loss_out_ref[...] = jnp.zeros_like(loss_out_ref)
        if need_focal:
            focal_out_ref[...] = jnp.zeros_like(focal_out_ref)

    def chunk_body(masked):
        def body(c, carry):
            row0 = pl.multiple_of(c * chunk_rows, chunk_rows)
            x = pred_ref[pl.ds(row0, chunk_rows), :].astype(jnp.float32)
            t = targ_ref[pl.ds(row0, chunk_rows), :].astype(jnp.float32)

            # Stable BCE-with-logits; e = exp(-|x|) is reused for the sigmoid.
            e = jnp.exp(-jnp.abs(x))
            bce = jnp.maximum(x, 0.0) - x * t + jnp.log1p(e)

            # sigmoid(x) = where(x>=0, 1, e) / (1+e): the divide becomes an EUP
            # reciprocal estimate + one Newton step (err ~eps^2, ~f32-exact).
            a = 1.0 + e
            r = pl.reciprocal(a, approx=True)
            r = r * (2.0 - a * r)
            p = jnp.where(x >= 0.0, 1.0, e) * r

            d = jnp.abs(p - t)
            focal = _focal_term(d, beta)
            loss = focal * bce

            if masked:
                # Row-granular validity: the wrapper guarantees lane alignment,
                # so only whole rows can be invalid.  int32 is fine for
                # rows_valid < 2^31 (i.e. < 2^38 elements).
                g_row = (block_id * tile_rows + row0
                         + lax.broadcasted_iota(jnp.int32, (chunk_rows, LANES), 0))
                valid = g_row < rows_valid
                loss = jnp.where(valid, loss, 0.0)
                if need_focal:
                    focal = jnp.where(valid, focal, 0.0)

            lp = carry[0] + loss.reshape(chunk_rows // SUBLANES, SUBLANES, LANES).sum(axis=0)
            if need_focal:
                fp = carry[1] + focal.reshape(chunk_rows // SUBLANES, SUBLANES, LANES).sum(axis=0)
                return (lp, fp)
            return (lp,)
        return body

    def init_carry():
        z = jnp.zeros((SUBLANES, LANES), jnp.float32)
        return (z, z) if need_focal else (z,)

    def accumulate(carry):
        loss_out_ref[...] += carry[0]
        if need_focal:
            focal_out_ref[...] += carry[1]

    def process_full():
        # Fast path: every row of the tile is valid -> no masking at all.
        accumulate(lax.fori_loop(0, n_chunks, chunk_body(False), init_carry()))

    def process_last():
        # Ragged last block: run its fully-valid chunks unmasked, mask only the
        # final partial chunk, and skip trailing empty chunks entirely.
        last_rows = rows_valid - (total_blocks - 1) * tile_rows   # static, in (0, tile_rows)
        full_chunks = last_rows // chunk_rows
        carry = init_carry()
        if full_chunks:
            carry = lax.fori_loop(0, full_chunks, chunk_body(False), carry)
        if last_rows % chunk_rows:
            carry = chunk_body(True)(jnp.int32(full_chunks), carry)
        accumulate(carry)

    if ragged:
        last = total_blocks - 1

        @pl.when(block_id != last)
        def _():
            process_full()

        @pl.when(block_id == last)
        def _():
            process_last()
    else:
        process_full()


def _qfl_pointwise(x, t, beta):
    """Elementwise QFL terms in plain jnp (used only for the <128-element tail)."""
    x = x.astype(jnp.float32)
    t = t.astype(jnp.float32)
    e = jnp.exp(-jnp.abs(x))
    bce = jnp.maximum(x, 0.0) - x * t + jnp.log1p(e)
    p = jnp.where(x >= 0.0, 1.0, e) / (1.0 + e)
    focal = _focal_term(jnp.abs(p - t), beta)
    return focal * bce, focal


def quality_focal_loss(predictions, targets, *, beta=2.0, reduction="mean"):
    """Pallas-TPU Quality Focal Loss forward. predictions/targets: same shape."""
    assert predictions.shape == targets.shape
    if reduction not in ("mean", "sum", "normalized"):
        # TODO(synk): 'none' reduction (full elementwise loss map) is not wired
        # to this scalar-reduction kernel.
        raise ValueError(f"Unsupported reduction: {reduction}")

    n = math.prod(predictions.shape)
    need_focal = reduction == "normalized"

    pred_flat = predictions.reshape(-1)   # native dtype; cast happens in-kernel
    targ_flat = targets.reshape(-1)

    # Lane alignment without a full-array jnp.pad copy: the <128-element tail is
    # folded in with plain jnp, so the kernel only ever sees whole 128-lane rows.
    rem = n % LANES
    n_main = n - rem
    tail_loss = jnp.float32(0.0)
    tail_focal = jnp.float32(0.0)
    if rem:
        tl, tf = _qfl_pointwise(pred_flat[n_main:], targ_flat[n_main:], beta)
        tail_loss = jnp.sum(tl)
        tail_focal = jnp.sum(tf)
        # TODO(synk): for very large lane-unaligned inputs the [:n_main] slice
        # below still materializes one copy; a zero-copy path would need a
        # manual memory_space=pl.ANY + make_async_copy pipeline.

    if n_main == 0:
        loss_sum = tail_loss
        focal_sum = tail_focal
    else:
        rows = n_main // LANES
        pred2d = (pred_flat[:n_main] if rem else pred_flat).reshape(rows, LANES)
        targ2d = (targ_flat[:n_main] if rem else targ_flat).reshape(rows, LANES)

        # Dtype-aware DMA tile: ~512 KiB per input stream (1024 rows f32,
        # 2048 rows bf16/f16); chunked compute keeps vreg pressure low anyway.
        itemsize = max(jnp.dtype(predictions.dtype).itemsize,
                       jnp.dtype(targets.dtype).itemsize)
        max_tile_rows = max(
            CHUNK_ROWS,
            (TARGET_TILE_BYTES // (LANES * itemsize)) // CHUNK_ROWS * CHUNK_ROWS)

        tile_rows = min(max_tile_rows, _round_up(rows, SUBLANES))
        if tile_rows >= CHUNK_ROWS:
            tile_rows = (tile_rows // CHUNK_ROWS) * CHUNK_ROWS   # multiple of the chunk
        num_blocks = pl.cdiv(rows, tile_rows)

        # v7x: split the block reduction across both TensorCores.  Rebalance the
        # tile so the block count is even and neither core idles.
        splits = 1
        if _num_tensorcores_per_chip() >= 2 and num_blocks >= 2:
            if num_blocks % 2:
                quantum = CHUNK_ROWS if rows >= CHUNK_ROWS else SUBLANES
                cand = _round_up(pl.cdiv(rows, num_blocks + 1), quantum)
                cand_blocks = pl.cdiv(rows, cand)
                if cand_blocks >= 2 and cand_blocks % 2 == 0:
                    tile_rows, num_blocks = cand, cand_blocks
            if num_blocks % 2 == 0:
                splits = 2
        inner = num_blocks // splits
        chunk_rows = CHUNK_ROWS if tile_rows % CHUNK_ROWS == 0 else tile_rows

        kernel = functools.partial(
            _qfl_kernel, beta=beta, rows_valid=rows, tile_rows=tile_rows,
            chunk_rows=chunk_rows, total_blocks=num_blocks, need_focal=need_focal)

        in_spec = pl.BlockSpec((tile_rows, LANES), lambda i, j: (i * inner + j, 0))
        out_spec = pl.BlockSpec((SUBLANES, LANES), lambda i, j: (i, 0))
        part_shape = jax.ShapeDtypeStruct((splits * SUBLANES, LANES), jnp.float32)

        if need_focal:
            out_shape = (part_shape, part_shape)
            out_specs = (out_spec, out_spec)
        else:
            out_shape = part_shape
            out_specs = out_spec

        outer_sem = pltpu.CORE_PARALLEL if splits == 2 else pltpu.ARBITRARY

        result = pl.pallas_call(
            kernel,
            out_shape=out_shape,
            grid_spec=pltpu.PrefetchScalarGridSpec(
                num_scalar_prefetch=0,
                grid=(splits, inner),
                in_specs=[in_spec, in_spec],
                out_specs=out_specs,
            ),
            compiler_params=pltpu.CompilerParams(
                dimension_semantics=(outer_sem, pltpu.ARBITRARY)),
        )(pred2d, targ2d)

        if need_focal:
            loss_part, focal_part = result
            focal_sum = jnp.sum(focal_part) + tail_focal
        else:
            loss_part = result
            focal_sum = None
        loss_sum = jnp.sum(loss_part) + tail_loss   # tiny (splits*8,128) reduce in XLA

    if reduction == "mean":
        return loss_sum / jnp.float32(n)
    if reduction == "sum":
        return loss_sum
    # 'normalized' matches the reference exactly, including returning inf/nan
    # when the focal-term sum is exactly zero.
    return loss_sum / focal_sum


def _reference(predictions, targets, *, beta=2.0, reduction="mean"):
    x = predictions.astype(jnp.float32)
    t = targets.astype(jnp.float32)
    bce = jnp.maximum(x, 0.0) - x * t + jnp.log1p(jnp.exp(-jnp.abs(x)))
    focal = jnp.abs(jax.nn.sigmoid(x) - t) ** beta
    loss = focal * bce
    if reduction == "mean":
        return loss.mean()
    if reduction == "sum":
        return loss.sum()
    if reduction == "normalized":
        return loss.sum() / focal.sum()
    return loss


if __name__ == "__main__":
    key = jax.random.PRNGKey(0)
    ok = True
    shapes = (
        (2, 4, 16, 16),   # lane-aligned NCHW (matches the torch module), single block
        (2, 3, 9, 9),     # lane-unaligned: jnp tail + ragged (row-masked) block
        (2, 8, 96, 96),   # multi-block: exercises grid accumulation / chunked body
    )
    for shape in shapes:
        k1, k2 = jax.random.split(jax.random.fold_in(key, math.prod(shape)))
        x = jax.random.normal(k1, shape, dtype=jnp.float32) * 2.0
        t = jax.random.uniform(k2, shape, dtype=jnp.float32)  # soft targets in [0, 1]
        for reduction in ("mean", "sum", "normalized"):
            out = jax.block_until_ready(
                quality_focal_loss(x, t, beta=2.0, reduction=reduction))
            ref = _reference(x, t, beta=2.0, reduction=reduction)
            if not jnp.allclose(out, ref, rtol=1e-4, atol=1e-5):
                ok = False
                print(f"MISMATCH shape={shape} ({reduction}): kernel={out} ref={ref}")

    if ok:
        print("KERNEL_OK")
</pallas_src>

<mosaic_0001>
module attributes {stable_mosaic.version = 11 : i64} {
  func.func @_qfl_kernel(%arg0: i32, %arg1: i32, %arg2: memref<16x128xf32, #tpu.memory_space<vmem>>, %arg3: memref<16x128xf32, #tpu.memory_space<vmem>>, %arg4: memref<8x128xf32, #tpu.memory_space<vmem>>) attributes {dimension_semantics = [#tpu.dimension_semantics<arbitrary>, #tpu.dimension_semantics<arbitrary>], iteration_bounds = array<i64: 1, 1>, scalar_prefetch = 0 : i64, scratch_operands = 0 : i64, tpu.core_type = #tpu.core_type<tc>, window_params = [{transform_indices = @transform_0, window_bounds = array<i64: 16, 128>}, {transform_indices = @transform_1, window_bounds = array<i64: 16, 128>}, {transform_indices = @transform_2, window_bounds = array<i64: 8, 128>}]} {
    %c0_i32 = arith.constant 0 : i32
    %0 = arith.cmpi eq, %arg1, %c0_i32 : i32
    %1 = arith.extui %0 : i1 to i32
    %c0_i32_0 = arith.constant 0 : i32
    %2 = arith.cmpi ne, %1, %c0_i32_0 : i32
    scf.if %2 {
      %cst_14 = arith.constant 0.000000e+00 : f32
      %42 = vector.broadcast %cst_14 : f32 to vector<8x128xf32>
      %c0_15 = arith.constant 0 : index
      %c0_16 = arith.constant 0 : index
      %43 = vector.load %arg4[%c0_15, %c0_16] : memref<8x128xf32, #tpu.memory_space<vmem>>, vector<8x128xf32>
      tpu.vector_store %arg4[%c0_15, %c0_16], %42 {strides = array<i32>} : memref<8x128xf32, #tpu.memory_space<vmem>>, vector<8x128xf32>,
    } else {
    }
    %cst = arith.constant 0.000000e+00 : f32
    %3 = vector.broadcast %cst : f32 to vector<8x128xf32>
    %c0_i32_1 = arith.constant 0 : i32
    %c16_i32 = arith.constant 16 : i32
    %4 = arith.muli %c0_i32_1, %c16_i32 : i32
    %5 = tpu.assume_multiple %4, 16 : i32
    %6 = arith.index_cast %5 : i32 to index
    %c0 = arith.constant 0 : index
    %7 = vector.load %arg2[%6, %c0] : memref<16x128xf32, #tpu.memory_space<vmem>>, vector<16x128xf32>
    %8 = arith.index_cast %5 : i32 to index
    %c0_2 = arith.constant 0 : index
    %9 = vector.load %arg3[%8, %c0_2] : memref<16x128xf32, #tpu.memory_space<vmem>>, vector<16x128xf32>
    %10 = math.absf %7 : vector<16x128xf32>
    %cst_3 = arith.constant 0.000000e+00 : f32
    %11 = vector.broadcast %cst_3 : f32 to vector<16x128xf32>
    %12 = arith.subf %11, %10 : vector<16x128xf32>
    %13 = math.exp %12 : vector<16x128xf32>
    %cst_4 = arith.constant 0.000000e+00 : f32
    %14 = vector.broadcast %cst_4 : f32 to vector<16x128xf32>
    %15 = arith.maximumf %7, %14 : vector<16x128xf32>
    %16 = arith.mulf %7, %9 : vector<16x128xf32>
    %17 = arith.subf %15, %16 : vector<16x128xf32>
    %18 = math.log1p %13 : vector<16x128xf32>
    %19 = arith.addf %17, %18 : vector<16x128xf32>
    %cst_5 = arith.constant 1.000000e+00 : f32
    %20 = vector.broadcast %cst_5 : f32 to vector<16x128xf32>
    %21 = arith.addf %20, %13 : vector<16x128xf32>
    %22 = tpu.reciprocal %21 {approx = true} : vector<16x128xf32> -> vector<16x128xf32>
    %23 = arith.mulf %21, %22 : vector<16x128xf32>
    %cst_6 = arith.constant 2.000000e+00 : f32
    %24 = vector.broadcast %cst_6 : f32 to vector<16x128xf32>
    %25 = arith.subf %24, %23 : vector<16x128xf32>
    %26 = arith.mulf %22, %25 : vector<16x128xf32>
    %cst_7 = arith.constant 0.000000e+00 : f32
    %27 = vector.broadcast %cst_7 : f32 to vector<16x128xf32>
    %28 = arith.cmpf oge, %7, %27 : vector<16x128xf32>
    %cst_8 = arith.constant 1.000000e+00 : f32
    %29 = vector.broadcast %cst_8 : f32 to vector<16x128xf32>
    %30 = arith.select %28, %29, %13 : vector<16x128xi1>, vector<16x128xf32>
    %31 = arith.mulf %30, %26 : vector<16x128xf32>
    %32 = arith.subf %31, %9 : vector<16x128xf32>
    %33 = math.absf %32 : vector<16x128xf32>
    %34 = arith.mulf %33, %33 : vector<16x128xf32>
    %35 = arith.mulf %34, %19 : vector<16x128xf32>
    %36 = vector.shape_cast %35 : vector<16x128xf32> to vector<2x8x128xf32>
    %cst_9 = arith.constant dense<0.000000e+00> : vector<8x128xf32>
    %37 = vector.multi_reduction <add>, %36, %cst_9 [0] : vector<2x8x128xf32> to vector<8x128xf32>
    %38 = arith.addf %3, %37 : vector<8x128xf32>
    %c1_i32 = arith.constant 1 : i32
    %c0_10 = arith.constant 0 : index
    %c0_11 = arith.constant 0 : index
    %39 = vector.load %arg4[%c0_10, %c0_11] : memref<8x128xf32, #tpu.memory_space<vmem>>, vector<8x128xf32>
    %40 = arith.addf %39, %38 : vector<8x128xf32>
    %c0_12 = arith.constant 0 : index
    %c0_13 = arith.constant 0 : index
    %41 = vector.load %arg4[%c0_12, %c0_13] : memref<8x128xf32, #tpu.memory_space<vmem>>, vector<8x128xf32>
    tpu.vector_store %arg4[%c0_12, %c0_13], %40 {strides = array<i32>} : memref<8x128xf32, #tpu.memory_space<vmem>>, vector<8x128xf32>,
    return
  }
  func.func @transform_0(%arg0: i32, %arg1: i32) -> (i32, i32) {
    %c1_i32 = arith.constant 1 : i32
    %0 = arith.muli %arg0, %c1_i32 : i32
    %1 = arith.addi %0, %arg1 : i32
    %c0_i32 = arith.constant 0 : i32
    %c0_i32_0 = arith.constant 0 : i32
    return %1, %c0_i32 : i32, i32
  }
  func.func @transform_1(%arg0: i32, %arg1: i32) -> (i32, i32) {
    %c1_i32 = arith.constant 1 : i32
    %0 = arith.muli %arg0, %c1_i32 : i32
    %1 = arith.addi %0, %arg1 : i32
    %c0_i32 = arith.constant 0 : i32
    %c0_i32_0 = arith.constant 0 : i32
    return %1, %c0_i32 : i32, i32
  }
  func.func @transform_2(%arg0: i32, %arg1: i32) -> (i32, i32) {
    %c0_i32 = arith.constant 0 : i32
    %c0_i32_0 = arith.constant 0 : i32
    return %arg0, %c0_i32 : i32, i32
  }
}

</mosaic_0001>

<bundles_post_ra>
// kernel: tpu_custom_call.1
= control target key start
LH: loop header
LB: loop body
LE: loop exit
PB: predicated region body
PF: predicated region fallthrough
CT: control target
= control target key end

     0   :  { %7 = vsyncpa [#allocation3], 0  ;;  %s286_s0 = inlined_call_operand.hbm [shape: f32[16,128], index: 0, kind: input, shape index: {}]   ;;  %s287_s1 = inlined_call_operand.hbm [shape: f32[16,128], index: 1, kind: input, shape index: {}]   ;;  %s288_s2 = inlined_call_operand.hbm [shape: f32[8,128], index: 2, kind: output, shape index: {}]  }
   0x1   :  { %8 = vsyncpa [#allocation6], 0 }
   0x2   :  { %9 = vsyncpa [#allocation4], 0  ;;  %s230_s9 = smov [#allocation2]   ;;  %s158_s13 = scalar_lea.hbm %s286_s0, 256 }
   0x3   :  { %s19_s10 = sshll.u32 %s230_s9, 4  ;;  %p159_p0 = scmp.ne.s32.totalorder %s286_s0, %s158_s13  ;;  %s20_s10 = int_to_ptr.vmem [resolvable:$true] %s19_s10 }
   0x4   :  { %p162_p1 = scmp.lt.u32.totalorder %s158_s13, %s286_s0 }
   0x6   :  { %p164_p2 = pnand %p162_p1, %p159_p0 }
   0x8   :  { %167 = shalt.err (!%p164_p2)
}
   0x9   :  { %s168_s18 = scalar_lea.vmem %s20_s10, 256  ;;  %p173_p4 = scmp.lt.s32.totalorder %s20_s10, %s20_s10 }
   0xa   :  { %p169_p3 = scmp.ne.s32.totalorder %s20_s10, %s168_s18  ;;  %p174_p5 = scmp.lt.s32.totalorder %s168_s18, %s168_s18 }
   0xc   :  { %p175_p6 = por %p174_p5, %p173_p4 }
   0xe   :  { %p176_p7 = pnand %p175_p6, %p169_p3 }
  0x10   :  { %179 = shalt.err (!%p176_p7)
}
  0x11   :  { %s231_s19 = smov 128   ;;  %s232_s20 = smov 8  }
  0x12   :  { %25 = dma.hbm_to_vmem [thread:$0]  %s286_s0, 256, %s20_s10, [#allocation3], %s231_s19, %s231_s19, %s232_s20  }
  0x13   :  { %s233_s23 = smov [#allocation5]   ;;  %s180_s27 = scalar_lea.hbm %s287_s1, 256 }
  0x14   :  { %s35_s24 = sshll.u32 %s233_s23, 4  ;;  %p181_p8 = scmp.ne.s32.totalorder %s287_s1, %s180_s27  ;;  %s36_s24 = int_to_ptr.vmem [resolvable:$true] %s35_s24 }
  0x15   :  { %p184_p9 = scmp.lt.u32.totalorder %s180_s27, %s287_s1 }
  0x17   :  { %p186_p10 = pnand %p184_p9, %p181_p8 }
  0x19   :  { %189 = shalt.err (!%p186_p10)
}
  0x1a   :  { %s190_s4 = scalar_lea.vmem %s36_s24, 256  ;;  %p195_p12 = scmp.lt.s32.totalorder %s36_s24, %s36_s24 }
  0x1b   :  { %p191_p11 = scmp.ne.s32.totalorder %s36_s24, %s190_s4  ;;  %p196_p13 = scmp.lt.s32.totalorder %s190_s4, %s190_s4 }
  0x1d   :  { %p197_p0 = por %p196_p13, %p195_p12 }
  0x1f   :  { %p198_p1 = pnand %p197_p0, %p191_p11 }
  0x21   :  { %201 = shalt.err (!%p198_p1)
}
  0x22   :  { %41 = dma.hbm_to_vmem [thread:$0]  %s287_s1, 256, %s36_s24, [#allocation6], %s231_s19, %s231_s19, %s232_s20  }
  0x23   :  { %224 = dma.done.wait [#allocation3], 256  }
  0x24   :  { %225 = vsyncadd [#allocation3], 4294967040 }
  0x25   :  { %226 = dma.done.wait [#allocation6], 256  }
  0x26   :  { %227 = vsyncadd [#allocation6], 4294967040  ;;  %v57_v0 = vld [vmem:[#allocation2] sm:$0xff]  ;;  %v58_v1 = vld [vmem:[#allocation2 + $0x8] sm:$0xff]  ;;  %s234_s1 = smov [#allocation7]  }
  0x27   :  { %v61_v2 = vand.u32 2147483647, %v57_v0  ;;  %v62_v3 = vand.u32 2147483647, %v58_v1  ;;  %v59_v15 = vld [vmem:[#allocation5] sm:$0xff]  ;;  %v60_v17 = vld [vmem:[#allocation5 + $0x8] sm:$0xff] }
  0x28   :  { %vm105_vm0 = vcmp.ge.f32.partialorder %v57_v0, 0.0  ;;  %vm106_vm1 = vcmp.ge.f32.partialorder %v58_v1, 0.0  ;;  %v69_v24 = vmax.f32 %v57_v0, 0.0  ;;  %v71_v25 = vmul.f32 %v59_v15, %v57_v0  ;;  %s130_s6 = sshll.u32 %s234_s1, 4  ;;  %s131_s6 = int_to_ptr.vmem [resolvable:$true] %s130_s6 }
  0x29   :  { %v63_v4 = vsub.f32 0.0, %v61_v2  ;;  %v64_v5 = vsub.f32 0.0, %v62_v3  ;;  %v70_v28 = vmax.f32 %v58_v1, 0.0  ;;  %v72_v29 = vmul.f32 %v60_v17, %v58_v1  ;;  %s202_s7 = scalar_lea.vmem %s131_s6, 128  ;;  %p207_p3 = scmp.lt.s32.totalorder %s131_s6, %s131_s6 }
  0x2a   :  { %v73_v40 = vsub.f32 %v69_v24, %v71_v25  ;;  %p203_p2 = scmp.ne.s32.totalorder %s131_s6, %s202_s7  ;;  %p208_p4 = scmp.lt.s32.totalorder %s202_s7, %s202_s7 }
  0x2b   :  { %v65_v6 = vmul.f32 1.442695, %v63_v4  ;;  %v67_v7 = vmul.f32 1.442695, %v64_v5  ;;  %v74_v42 = vsub.f32 %v70_v28, %v72_v29 }
  0x2c   :  { %p209_p5 = por %p208_p4, %p207_p3 }
  0x2d   :  { %146 = vpow2.f32 %v65_v6 }
  0x2e   :  { %148 = vpow2.f32 %v67_v7  ;;  %p210_p6 = pnand %p209_p5, %p203_p2 }
  0x37   :  { %v147_v8 = vpop.eup %146 }
  0x38   :  { %v149_v9 = vpop.eup %148  ;;  %v75_v10 = vadd.f32 1.0, %v147_v8  ;;  %v78_v12 = vmul.f32 -0.5, %v147_v8  ;;  %v81_v20 = vand.u32 2147483647, %v147_v8  ;;  %v107_v31 = vsel %vm105_vm0, 1.0, %v147_v8 }
  0x39   :  { %v84_v11 = vadd.f32 1.0, %v149_v9  ;;  %v87_v13 = vmul.f32 -0.5, %v149_v9  ;;  %v90_v26 = vand.u32 2147483647, %v149_v9  ;;  %v108_v35 = vsel %vm106_vm1, 1.0, %v149_v9 }
  0x3a   :  { %150 = vlog2.f32 %v75_v10  ;;  %v79_v18 = vadd.f32 1.0, %v78_v12  ;;  %vm82_vm2 = vcmp.lt.f32.partialorder %v81_v20, 0.0004427343 }
  0x3b   :  { %152 = vrcp.f32 %v75_v10  ;;  %v88_v21 = vadd.f32 1.0, %v87_v13  ;;  %vm91_vm3 = vcmp.lt.f32.partialorder %v90_v26, 0.0004427343 }
  0x3c   :  { %154 = vrcp.f32 %v84_v11  ;;  %v80_v33 = vmul.f32 %v147_v8, %v79_v18 }
  0x3d   :  { %156 = vlog2.f32 %v84_v11  ;;  %v89_v37 = vmul.f32 %v149_v9, %v88_v21 }
  0x44   :  { %v151_v14 = vpop.eup %150 }
  0x45   :  { %v153_v16 = vpop.eup %152  ;;  %v77_v32 = vmul.f32 0.6931472, %v151_v14 }
  0x46   :  { %v155_v19 = vpop.eup %154  ;;  %v99_v22 = vmul.f32 %v153_v16, %v75_v10 }
  0x47   :  { %v157_v23 = vpop.eup %156  ;;  %v100_v27 = vmul.f32 %v155_v19, %v84_v11  ;;  %v83_v43 = vsel %vm82_vm2, %v80_v33, %v77_v32 }
  0x48   :  { %v101_v30 = vsub.f32 2.0, %v99_v22  ;;  %v86_v36 = vmul.f32 0.6931472, %v157_v23  ;;  %v93_v48 = vadd.f32 %v83_v43, %v73_v40 }
  0x49   :  { %v102_v34 = vsub.f32 2.0, %v100_v27 }
  0x4a   :  { %v103_v38 = vmul.f32 %v153_v16, %v101_v30  ;;  %v92_v45 = vsel %vm91_vm3, %v89_v37, %v86_v36 }
  0x4b   :  { %v104_v39 = vmul.f32 %v155_v19, %v102_v34  ;;  %v94_v50 = vadd.f32 %v92_v45, %v74_v42 }
  0x4c   :  { %v109_v41 = vmul.f32 %v107_v31, %v103_v38 }
  0x4d   :  { %v110_v44 = vmul.f32 %v108_v35, %v104_v39 }
  0x4e   :  { %v111_v46 = vsub.f32 %v109_v41, %v59_v15 }
  0x4f   :  { %v112_v47 = vsub.f32 %v110_v44, %v60_v17 }
  0x50   :  { %v113_v49 = vand.u32 2147483647, %v111_v46 }
  0x51   :  { %v114_v51 = vand.u32 2147483647, %v112_v47 }
  0x52   :  { %v115_v52 = vmul.f32 %v113_v49, %v113_v49 }
  0x53   :  { %v116_v53 = vmul.f32 %v114_v51, %v114_v51 }
  0x54   :  { %v117_v54 = vmul.f32 %v115_v52, %v93_v48 }
  0x55   :  { %v118_v55 = vmul.f32 %v116_v53, %v94_v50 }
  0x57   :  { %v119_v56 = vadd.f32 %v118_v55, %v117_v54 }
  0x59   :  { %123 = vst [vmem:[#allocation7] sm:$0xff] %v119_v56 }
  0x5a   :  { %213 = shalt.err (!%p210_p6)
}
  0x5b   :  { %s214_s10 = scalar_lea.hbm %s288_s2, 128 }
  0x5c   :  { %p215_p7 = scmp.ne.s32.totalorder %s288_s2, %s214_s10  ;;  %p218_p8 = scmp.lt.u32.totalorder %s214_s10, %s288_s2 }
  0x5e   :  { %p220_p9 = pnand %p218_p8, %p215_p7 }
  0x60   :  { %223 = shalt.err (!%p220_p9)
}
  0x61   :  { %133 = dma.vmem_to_hbm [thread:$0]  %s131_s6, 128, %s288_s2, [#allocation4]  }
  0x62   :  { %228 = dma.done.wait [#allocation4], 128  }
  0x63   :  { %229 = vsyncadd [#allocation4], 4294967168 }
  0x64   :  { %137 = vsyncpa [#allocation3], 1 }
  0x65   :  { %138 = vsyncpa [#allocation6], 1 }
  0x66   :  { %139 = vsyncpa [#allocation4], 1 }

</bundles_post_ra>
